<compile_context>
chip_gen: v6e
topology: v6e:2x2x1
jax: 0.10.0
libtpu: 0.0.40
codegen_flags: <defaults>
</compile_context>

<pallas_src>
import jax
import jax.numpy as jnp
from jax.experimental import pallas as pl
from jax.experimental.pallas import tpu as pltpu


def _make_kernel(fused: bool, multi_k: bool):
    """Build the per-(tS, tF) output-tile kernel.

    Refs (batch dim squeezed):
      x_ref: (tS, tK)   activation tile
      w_ref: (tK, tF)   pre-transposed weight tile (MXU-native K-major RHS)
      b_ref: (1,  tF)   f32 bias row (sublane broadcast)
      o_ref: (tF, tS)   when fused  (permute folded into the store)
             (tS, tF)   otherwise   (lane-dense fallback)
      acc_ref (multi_k only): (tS, tF) f32 accumulator scratch
    """
    if multi_k:
        def kernel(x_ref, w_ref, b_ref, o_ref, acc_ref):
            k = pl.program_id(3)

            @pl.when(k == 0)
            def _():
                acc_ref[...] = jnp.zeros_like(acc_ref)

            acc_ref[...] += jnp.dot(
                x_ref[...], w_ref[...], preferred_element_type=jnp.float32
            )

            @pl.when(k == pl.num_programs(3) - 1)
            def _():
                y = acc_ref[...] + b_ref[...]
                if fused:
                    y = jnp.transpose(y)  # XLU transpose rides the free slot
                o_ref[...] = y.astype(o_ref.dtype)
    else:
        def kernel(x_ref, w_ref, b_ref, o_ref):
            y = jnp.dot(
                x_ref[...], w_ref[...], preferred_element_type=jnp.float32
            ) + b_ref[...]
            if fused:
                y = jnp.transpose(y)
            o_ref[...] = y.astype(o_ref.dtype)

    return kernel


def _pick_tile(dim, target, align):
    """Largest divisor of `dim` that is <= target and a multiple of `align`.

    Falls back to the full extent when `dim <= target` or when no aligned
    divisor exists (a full-extent block is always a legal block shape)."""
    if dim <= target:
        return dim
    t = (min(target, dim) // align) * align
    while t >= align:
        if dim % t == 0:
            return t
        t -= align
    # TODO(synk): pad + mask (pl.cdiv grid + edge guard) for pathological dims.
    return dim


def linear_permute(x, w, b, *, block_s=512, block_f=512, block_k=1024,
                   compute_dtype=jnp.bfloat16):
    """Equivalent of torch: F.linear(x, w, b).permute(0, 2, 1).

    x: (B, S, K), w: (F, K) [torch layout], b: (F,)  ->  (B, F, S)
    """
    B, S, K = x.shape
    F_out = w.shape[0]
    out_dtype = x.dtype

    # One-time layout / dtype plumbing outside the hot loop.
    if compute_dtype is not None and x.dtype != compute_dtype:
        x_c = x.astype(compute_dtype)
        w_c = w.astype(compute_dtype)
    else:
        x_c, w_c = x, w
    w_kf = jnp.transpose(w_c)                        # (K, F): MXU-native RHS
    b_row = b.astype(jnp.float32).reshape(1, F_out)  # f32 bias, added in f32

    # --- tile selection ---------------------------------------------------
    tS = _pick_tile(S, block_s, 128)
    if tS == S and S > block_s:        # no lane-aligned divisor: sublane align
        tS = _pick_tile(S, block_s, 8)
    tF = _pick_tile(F_out, block_f, 128)
    tK = _pick_tile(K, block_k, 128)

    # v7x has two TensorCores: keep >= 2 parallel blocks when possible.
    if B * (S // tS) * (F_out // tF) < 2 and tF % 256 == 0:
        tF //= 2

    nK = K // tK
    grid = (B, S // tS, F_out // tF, nK)
    multi_k = nK > 1

    # Fuse the permute(0, 2, 1) into the output store when the transposed tile
    # is lane-dense (S on lanes, 128-aligned).  Otherwise store (B, S, F)
    # lane-dense and transpose in the wrapper (small-S fallback).
    fused = (tS % 128 == 0)

    # --- VMEM budget (double-buffered ins/outs + f32 accumulator) ----------
    in_isz = x_c.dtype.itemsize
    out_isz = jnp.dtype(out_dtype).itemsize
    working_set = (2 * (tS * tK * in_isz + tK * tF * in_isz + tF * 4)
                   + 2 * tS * tF * out_isz)
    if multi_k:
        working_set += tS * tF * 4
    vmem_limit = None
    if working_set > 24 * 1024 * 1024:     # above v5e/v7x scoped defaults
        vmem_limit = int(min(working_set * 1.3, 60 * 1024 * 1024))

    if fused:
        out_shape = jax.ShapeDtypeStruct((B, F_out, S), out_dtype)
        out_spec = pl.BlockSpec((None, tF, tS), lambda bb, si, fi, ki: (bb, fi, si))
    else:
        out_shape = jax.ShapeDtypeStruct((B, S, F_out), out_dtype)
        out_spec = pl.BlockSpec((None, tS, tF), lambda bb, si, fi, ki: (bb, si, fi))

    scratch = [pltpu.VMEM((tS, tF), jnp.float32)] if multi_k else []

    cost = pl.CostEstimate(
        flops=2 * B * S * K * F_out,
        transcendentals=0,
        bytes_accessed=(B * S * K * in_isz + K * F_out * in_isz
                        + F_out * 4 + B * S * F_out * out_isz),
    )

    y = pl.pallas_call(
        _make_kernel(fused, multi_k),
        out_shape=out_shape,
        grid_spec=pltpu.PrefetchScalarGridSpec(
            num_scalar_prefetch=0,
            grid=grid,
            in_specs=[
                # batch dim squeezed out of the kernel view
                pl.BlockSpec((None, tS, tK), lambda bb, si, fi, ki: (bb, si, ki)),
                pl.BlockSpec((tK, tF), lambda bb, si, fi, ki: (ki, fi)),
                pl.BlockSpec((1, tF), lambda bb, si, fi, ki: (0, fi)),
            ],
            out_specs=out_spec,
            scratch_shapes=scratch,
        ),
        compiler_params=pltpu.CompilerParams(
            dimension_semantics=("parallel", "parallel", "parallel", "arbitrary"),
            vmem_limit_bytes=vmem_limit,
        ),
        cost_estimate=cost,
    )(x_c, w_kf, b_row)

    if fused:
        return y
    # Small-S fallback: permute outside the kernel (stores stay unmasked).
    return jnp.transpose(y, (0, 2, 1))


if __name__ == "__main__":
    key = jax.random.PRNGKey(0)
    k_x, k_w, k_b, k_x2, k_w2, k_b2 = jax.random.split(key, 6)

    # ---- Module-sized check: nn.Linear(2, 2) on x1 ~ randn(1, 2, 2) -------
    B, S, IN, OUT = 1, 2, 2, 2
    bound = 1.0 / (IN ** 0.5)  # torch.nn.Linear default init range
    w = jax.random.uniform(k_w, (OUT, IN), jnp.float32, minval=-bound, maxval=bound)
    b = jax.random.uniform(k_b, (OUT,), jnp.float32, minval=-bound, maxval=bound)
    x = jax.random.normal(k_x, (B, S, IN), jnp.float32)

    out = jax.block_until_ready(linear_permute(x, w, b, compute_dtype=None))
    ref = jnp.transpose(jnp.einsum("bsk,fk->bsf", x, w) + b, (0, 2, 1))
    assert out.shape == (B, OUT, S)
    assert jnp.allclose(out, ref, atol=1e-5, rtol=1e-5)

    # ---- Tiled bf16 path: multi-K accumulation + fused in-kernel permute --
    B2, S2, K2, F2 = 2, 256, 512, 384
    bound2 = 1.0 / (K2 ** 0.5)
    w2 = jax.random.uniform(k_w2, (F2, K2), jnp.float32, minval=-bound2, maxval=bound2)
    b2 = jax.random.uniform(k_b2, (F2,), jnp.float32, minval=-bound2, maxval=bound2)
    x2 = jax.random.normal(k_x2, (B2, S2, K2), jnp.float32)

    # Reference uses the same bf16 operands / f32 accumulation as the kernel.
    ref2 = jnp.transpose(
        jnp.einsum("bsk,fk->bsf",
                   x2.astype(jnp.bfloat16), w2.astype(jnp.bfloat16),
                   preferred_element_type=jnp.float32) + b2,
        (0, 2, 1),
    )

    out2 = jax.block_until_ready(
        linear_permute(x2, w2, b2, block_s=128, block_f=128, block_k=128)
    )
    assert out2.shape == (B2, F2, S2)
    assert jnp.allclose(out2, ref2, atol=2e-3, rtol=2e-3)

    # ---- Single-K (direct-store, no scratch) fused path --------------------
    out3 = jax.block_until_ready(
        linear_permute(x2, w2, b2, block_s=256, block_f=128, block_k=512)
    )
    assert out3.shape == (B2, F2, S2)
    assert jnp.allclose(out3, ref2, atol=2e-3, rtol=2e-3)

    # TODO(synk): the module's .to('cpu') moves, dead scalar arithmetic and the
    # discarded second linear (v7) do not affect the returned value and are
    # intentionally not reproduced.
    print("KERNEL_OK")
</pallas_src>

<mosaic_0001>
module attributes {stable_mosaic.version = 11 : i64} {
  func.func @kernel(%arg0: i32, %arg1: i32, %arg2: i32, %arg3: i32, %arg4: memref<1x2x2xf32, #tpu.memory_space<vmem>>, %arg5: memref<2x2xf32, #tpu.memory_space<vmem>>, %arg6: memref<1x2xf32, #tpu.memory_space<vmem>>, %arg7: memref<1x2x2xf32, #tpu.memory_space<vmem>>) attributes {dimension_semantics = [#tpu.dimension_semantics<parallel>, #tpu.dimension_semantics<parallel>, #tpu.dimension_semantics<parallel>, #tpu.dimension_semantics<arbitrary>], iteration_bounds = array<i64: 1, 1, 1, 1>, scalar_prefetch = 0 : i64, scratch_operands = 0 : i64, tpu.core_type = #tpu.core_type<tc>, window_params = [{transform_indices = @transform_0, window_bounds = array<i64: 1, 2, 2>}, {transform_indices = @transform_1, window_bounds = array<i64: 2, 2>}, {transform_indices = @transform_2, window_bounds = array<i64: 1, 2>}, {transform_indices = @transform_3, window_bounds = array<i64: 1, 2, 2>}]} {
    %c0 = arith.constant 0 : index
    %c0_0 = arith.constant 0 : index
    %c0_1 = arith.constant 0 : index
    %0 = vector.load %arg4[%c0, %c0_0, %c0_1] : memref<1x2x2xf32, #tpu.memory_space<vmem>>, vector<1x2x2xf32>
    %1 = vector.shape_cast %0 : vector<1x2x2xf32> to vector<2x2xf32>
    %c0_2 = arith.constant 0 : index
    %c0_3 = arith.constant 0 : index
    %2 = vector.load %arg5[%c0_2, %c0_3] : memref<2x2xf32, #tpu.memory_space<vmem>>, vector<2x2xf32>
    %cst = arith.constant dense<0.000000e+00> : vector<2x2xf32>
    %3 = tpu.matmul %1, %2, %cst {dimension_numbers = #tpu.dot_dimension_numbers<[1], [0], [0], [1], [0, 0, 1, 1], [], []>} : vector<2x2xf32>, vector<2x2xf32>, vector<2x2xf32> -> vector<2x2xf32>
    %c0_4 = arith.constant 0 : index
    %c0_5 = arith.constant 0 : index
    %4 = vector.load %arg6[%c0_4, %c0_5] : memref<1x2xf32, #tpu.memory_space<vmem>>, vector<1x2xf32>
    %5 = vector.broadcast %4 : vector<1x2xf32> to vector<2x2xf32>
    %6 = arith.addf %3, %5 : vector<2x2xf32>
    %c0_6 = arith.constant 0 : index
    %c0_7 = arith.constant 0 : index
    %c0_8 = arith.constant 0 : index
    %7 = vector.load %arg7[%c0_6, %c0_7, %c0_8] : memref<1x2x2xf32, #tpu.memory_space<vmem>>, vector<1x2x2xf32>
    %8 = vector.shape_cast %7 : vector<1x2x2xf32> to vector<2x2xf32>
    %9 = vector.shape_cast %6 : vector<2x2xf32> to vector<1x2x2xf32>
    tpu.vector_store %arg7[%c0_6, %c0_7, %c0_8], %9 {strides = array<i32>} : memref<1x2x2xf32, #tpu.memory_space<vmem>>, vector<1x2x2xf32>,
    return
  }
  func.func @transform_0(%arg0: i32, %arg1: i32, %arg2: i32, %arg3: i32) -> (i32, i32, i32) {
    %c0_i32 = arith.constant 0 : i32
    return %arg0, %arg1, %arg3 : i32, i32, i32
  }
  func.func @transform_1(%arg0: i32, %arg1: i32, %arg2: i32, %arg3: i32) -> (i32, i32) {
    %c0_i32 = arith.constant 0 : i32
    return %arg3, %arg2 : i32, i32
  }
  func.func @transform_2(%arg0: i32, %arg1: i32, %arg2: i32, %arg3: i32) -> (i32, i32) {
    %c0_i32 = arith.constant 0 : i32
    %c0_i32_0 = arith.constant 0 : i32
    return %c0_i32, %arg2 : i32, i32
  }
  func.func @transform_3(%arg0: i32, %arg1: i32, %arg2: i32, %arg3: i32) -> (i32, i32, i32) {
    %c0_i32 = arith.constant 0 : i32
    return %arg0, %arg1, %arg2 : i32, i32, i32
  }
}

</mosaic_0001>

<bundles_post_ra>
// kernel: tpu_custom_call.1
= control target key start
LH: loop header
LB: loop body
LE: loop exit
PB: predicated region body
PF: predicated region fallthrough
CT: control target
= control target key end

     0   :  { %8 = vsyncpa [#allocation3], 0  ;;  %s262_s0 = inlined_call_operand.hbm [shape: f32[1,2,2], index: 0, kind: input, shape index: {}]   ;;  %s263_s1 = inlined_call_operand.hbm [shape: f32[2,2], index: 1, kind: input, shape index: {}]   ;;  %s264_s2 = inlined_call_operand.vmem [shape: f32[1,2], index: 2, kind: input, shape index: {}]   ;;  %s265_s3 = inlined_call_operand.hbm [shape: f32[1,2,2], index: 3, kind: output, shape index: {}]  }
   0x1   :  { %9 = vsyncpa [#allocation6], 0 }
   0x2   :  { %10 = vsyncpa [#allocation4], 0  ;;  %s225_s12 = smov [#allocation2]   ;;  %s226_s14 = smov [#allocation5]  }
   0x3   :  { %s17_s13 = sshll.u32 %s225_s12, 4  ;;  %s27_s15 = sshll.u32 %s226_s14, 4  ;;  %s18_s13 = int_to_ptr.vmem [resolvable:$true] %s17_s13  ;;  %s28_s15 = int_to_ptr.vmem [resolvable:$true] %s27_s15 }
   0x4   :  { %s167_s16 = scalar_lea.vmem %s18_s13, 32  ;;  %p172_p1 = scmp.lt.s32.totalorder %s18_s13, %s18_s13 }
   0x5   :  { %p168_p0 = scmp.ne.s32.totalorder %s18_s13, %s167_s16  ;;  %p173_p2 = scmp.lt.s32.totalorder %s167_s16, %s167_s16 }
   0x7   :  { %p174_p3 = por %p173_p2, %p172_p1 }
   0x9   :  { %p175_p4 = pnand %p174_p3, %p168_p0 }
   0xb   :  { %178 = shalt.err (!%p175_p4)
}
   0xc   :  { %20 = dma.hbm_to_vmem [thread:$0]  %s262_s0, 32, %s18_s13, [#allocation3]  }
   0xd   :  { %s187_s19 = scalar_lea.vmem %s28_s15, 32  ;;  %p192_p6 = scmp.lt.s32.totalorder %s28_s15, %s28_s15 }
   0xe   :  { %p188_p5 = scmp.ne.s32.totalorder %s28_s15, %s187_s19  ;;  %p193_p7 = scmp.lt.s32.totalorder %s187_s19, %s187_s19 }
  0x10   :  { %p194_p8 = por %p193_p7, %p192_p6 }
  0x12   :  { %p195_p9 = pnand %p194_p8, %p188_p5 }
  0x14   :  { %198 = shalt.err (!%p195_p9)
}
  0x15   :  { %30 = dma.hbm_to_vmem [thread:$0]  %s263_s1, 32, %s28_s15, [#allocation6]  }
  0x16   :  { %219 = dma.done.wait [#allocation3], 32  }
  0x17   :  { %220 = vsyncadd [#allocation3], 4294967264 }
  0x18   :  { %221 = dma.done.wait [#allocation6], 32  }
  0x19   :  { %222 = vsyncadd [#allocation6], 4294967264  ;;  %v227_v0 = vmov 0.0   ;;  %vm228_vm0 = vmmov 0   ;;  %vm52_vm1 = vcmask 1041408   ;;  %vm48_vm2 = vcmask 15360  }
  0x1a   :  { %149 = vmatprep.subr.mxu0 %v227_v0  ;;  %151 = vmatprep.mubr.msk.f32.mxu0 %vm228_vm0, %v227_v0  ;;  %v40_v1 = vld [vmem:[#allocation5] sm:$0x3]  ;;  %v39_v2 = vld [vmem:[#allocation2] sm:$0x3]  ;;  %s229_s23 = smov [#allocation7]   ;;  %vm126_vm3 = vcmask 9216  }
  0x1b   :  { %150 = vmatpush3.msk.msra.mxu0 %vm52_vm1, %v40_v1  ;;  %v144_v3 = vld [vmem:[%s264_s2] ss:$0 sm:$0xff]  ;;  %s134_s1 = sshll.u32 %s229_s23, 4  ;;  %s135_s1 = int_to_ptr.vmem [resolvable:$true] %s134_s1 }
  0x1c   :  { %152 = vmatmul.mubr.msk.f32.vlgmr.msra.gmra.mxu0 %vm48_vm2, %v39_v2  ;;  %s199_s24 = scalar_lea.vmem %s135_s1, 32  ;;  %p204_p11 = scmp.lt.s32.totalorder %s135_s1, %s135_s1 }
  0x1d   :  { %p200_p10 = scmp.ne.s32.totalorder %s135_s1, %s199_s24  ;;  %p205_p12 = scmp.lt.s32.totalorder %s199_s24, %s199_s24 }
  0x1f   :  { %p206_p13 = por %p205_p12, %p204_p11 }
  0x21   :  { %p207_p0 = pnand %p206_p13, %p200_p10 }
  0xdc   :  { %v122_v4 = vpop.f32.mrf.mxu0 }
  0xdd   :  { %v123_v5 = vadd.f32 %v144_v3, %v122_v4 }
  0xde   :  { %v153_v6 = vpop.f32.mrf.mxu0 }
  0xdf   :  { %127 = vst.msk [vmem:[#allocation7] sm:$0x3] %vm126_vm3, %v123_v5 }
  0xe0   :  { %210 = shalt.err (!%p207_p0)
}
  0xe1   :  { %137 = dma.vmem_to_hbm [thread:$0]  %s135_s1, 32, %s265_s3, [#allocation4]  }
  0xe2   :  { %223 = dma.done.wait [#allocation4], 32  }
  0xe3   :  { %224 = vsyncadd [#allocation4], 4294967264 }
  0xe4   :  { %141 = vsyncpa [#allocation3], 1 }
  0xe5   :  { %142 = vsyncpa [#allocation6], 1 }
  0xe6   :  { %143 = vsyncpa [#allocation4], 1 }

</bundles_post_ra>
